<compile_context>
chip_gen: v7x
topology: tpu7x:2x2x1
jax: 0.10.0
libtpu: 0.0.40
codegen_flags: <defaults>
</compile_context>

<pallas_src>
import jax
import jax.numpy as jnp
from jax.experimental import pallas as pl
from jax.experimental.pallas import tpu as pltpu


def _make_kernel(eps, dim_head):
    dh = dim_head

    def kernel(x_ref, gamma_ref, beta_ref, wqkv_ref, wout_ref, bout_ref,
               o_ref, xn_s, acc_s):
        h = pl.program_id(1)

        # ---- once per batch element (h == 0): channel LayerNorm + layout ----
        @pl.when(h == 0)
        def _():
            x = x_ref[0]                                     # (C, N) f32
            mean = jnp.mean(x, axis=0, keepdims=True)        # (1, N)
            var = jnp.mean((x - mean) ** 2, axis=0, keepdims=True)
            # PyTorch module: (x - mean) / (sqrt(var) + eps) * w + b
            xc = (x - mean) / (jnp.sqrt(var) + eps)          # (C, N)
            # token-major for lane-dense matmuls; per-channel affine after
            xn = jnp.transpose(xc) * gamma_ref[...] + beta_ref[...]   # (N, C)
            xn_s[...] = xn.astype(jnp.bfloat16)
            acc_s[...] = jnp.zeros_like(acc_s)

        xn = xn_s[...]                                       # (N, C) bf16

        # ---- per-head fused Q/K/V projection: ONE MXU matmul per head ------
        # weight layout (C, 3*dh) = [Wq * scale | Wk | Wv], f32 accumulation.
        qkv = jnp.dot(xn, wqkv_ref[0],
                      preferred_element_type=jnp.float32)    # (N, 3*dh) f32
        q = qkv[:, 0 * dh:1 * dh].astype(jnp.bfloat16)       # (N, dh) scale folded
        k = qkv[:, 1 * dh:2 * dh].astype(jnp.bfloat16)
        v = qkv[:, 2 * dh:3 * dh].astype(jnp.bfloat16)

        # ---- attention: only one (N, N) score tile live per grid step ------
        s = jnp.einsum('nd,md->nm', q, k,
                       preferred_element_type=jnp.float32)   # (N, N) f32
        s = s - jnp.max(s, axis=-1, keepdims=True)
        p = jnp.exp(s)        # keep exp in f32 (v5e has no bf16 EUP/VPU)
        p = p * pl.reciprocal(jnp.sum(p, axis=-1, keepdims=True), approx=True)

        o_h = jnp.dot(p.astype(jnp.bfloat16), v,
                      preferred_element_type=jnp.float32)    # (N, dh)

        # ---- fused per-head slice of the output 1x1 conv, accumulated ------
        acc_s[...] += jnp.dot(o_h.astype(jnp.bfloat16), wout_ref[0],
                              preferred_element_type=jnp.float32)        # (N, C)

        # ---- last head: add bias, back to channel-major, store -------------
        @pl.when(h == pl.num_programs(1) - 1)
        def _():
            y = acc_s[...] + bout_ref[...]                   # (N, C)
            o_ref[0] = jnp.transpose(y).astype(o_ref.dtype)  # (C, N)

    return kernel


def global_aggr(x, params, heads, dim_head, eps=1e-5):
    """x: (B, C, T, H, W) float32.  Returns (B, C, T, H, W)."""
    B, C, T, H, W = x.shape
    N = T * H * W
    inner = heads * dim_head
    assert inner == C, "GlobalAggr reshape semantics require dim_head*heads == dim"
    scale = float(dim_head) ** (-0.5)

    gamma, beta, wqkv, wout, bout = params

    # Per-head, lane-dense weight layouts (tiny trace-time transforms).
    # wqkv: (3*inner, C) conv weight; row index = ((s*heads + h)*dim_head + d).
    w3 = wqkv.reshape(3, heads, dim_head, C)                          # [s, h, d, c]
    wq_h = jnp.transpose(w3[0], (0, 2, 1)) * scale                    # (h, C, dh)
    wk_h = jnp.transpose(w3[1], (0, 2, 1))                            # (h, C, dh)
    wv_h = jnp.transpose(w3[2], (0, 2, 1))                            # (h, C, dh)
    # Fused per-head projection weight: (h, C, 3*dh) = [Wq*scale | Wk | Wv].
    wqkv_h = jnp.concatenate([wq_h, wk_h, wv_h], axis=-1).astype(jnp.bfloat16)
    # wout: (C, inner), column index = h*dim_head + d  ->  per-head (dh, C)
    wo_h = jnp.transpose(wout.reshape(C, heads, dim_head), (1, 2, 0)
                         ).astype(jnp.bfloat16)                        # (h, dh, C)

    gamma2 = gamma.reshape(1, C).astype(jnp.float32)
    beta2 = beta.reshape(1, C).astype(jnp.float32)
    bout2 = bout.reshape(1, C).astype(jnp.float32)

    # (B, C, T, H, W) -> (B, C, N): contiguous reshape, no HBM transpose pass.
    x_cn = x.reshape(B, C, N)

    # Explicit VMEM budget (v7x: 64 MiB physical, 32 MiB default scoped limit).
    f32b, bf16b = 4, 2
    est = (2 * C * N * f32b                      # x blocks (double-buffered)
           + 2 * C * N * f32b                    # output blocks
           + 2 * C * (3 * dim_head) * bf16b      # fused per-head qkv weight
           + 2 * dim_head * C * bf16b            # per-head out-projection weight
           + 3 * C * f32b                        # gamma / beta / bias
           + N * C * (bf16b + f32b)              # xn scratch + accumulator scratch
           + 8 * N * N * f32b)                   # attention intermediates + headroom
    vmem_bytes = int(min(max(est + (4 << 20), 32 << 20), 56 << 20))

    kernel = _make_kernel(eps, dim_head)

    y_cn = pl.pallas_call(
        kernel,
        out_shape=jax.ShapeDtypeStruct((B, C, N), x.dtype),
        grid_spec=pltpu.PrefetchScalarGridSpec(
            num_scalar_prefetch=0,
            grid=(B, heads),          # head axis = reduction axis, last
            in_specs=[
                pl.BlockSpec((1, C, N), lambda b, h: (b, 0, 0)),            # x (channel-major)
                # grid-invariant params: block index never changes, so they are
                # fetched once and not re-DMA'd per grid step.
                pl.BlockSpec((1, C), lambda b, h: (0, 0)),                  # LN gamma
                pl.BlockSpec((1, C), lambda b, h: (0, 0)),                  # LN beta
                pl.BlockSpec((1, C, 3 * dim_head), lambda b, h: (h, 0, 0)),  # fused Wqkv
                pl.BlockSpec((1, dim_head, C), lambda b, h: (h, 0, 0)),     # Wout head slice
                pl.BlockSpec((1, C), lambda b, h: (0, 0)),                  # b_out
            ],
            out_specs=pl.BlockSpec((1, C, N), lambda b, h: (b, 0, 0)),
            scratch_shapes=[
                pltpu.VMEM((N, C), jnp.bfloat16),   # normalized tokens, reused per head
                pltpu.VMEM((N, C), jnp.float32),    # fused output-projection accumulator
            ],
        ),
        compiler_params=pltpu.CompilerParams(
            dimension_semantics=("parallel", "arbitrary"),
            vmem_limit_bytes=vmem_bytes),
    )(x_cn, gamma2, beta2, wqkv_h, wo_h, bout2)

    return y_cn.reshape(B, C, T, H, W)


def global_aggr_ref(x, params, heads, dim_head, eps=1e-5):
    """Pure-JAX f32 reference mirroring the PyTorch forward."""
    B, C, T, H, W = x.shape
    N = T * H * W
    inner = heads * dim_head
    scale = float(dim_head) ** (-0.5)
    gamma, beta, wqkv, wout, bout = params

    mean = jnp.mean(x, axis=1, keepdims=True)
    var = jnp.mean((x - mean) ** 2, axis=1, keepdims=True)
    xn = (x - mean) / (jnp.sqrt(var) + eps) * gamma.reshape(1, C, 1, 1, 1) \
         + beta.reshape(1, C, 1, 1, 1)

    xf = xn.reshape(B, C, N)
    qkv = jnp.einsum('oc,bcn->bon', wqkv, xf)                 # (B, 3*inner, N)
    qkv = qkv.reshape(B, 3, heads, dim_head, N).transpose(0, 1, 2, 4, 3)
    q, k, v = qkv[:, 0], qkv[:, 1], qkv[:, 2]                 # (B, h, N, dh)
    q = q * scale
    attn = jnp.einsum('bhnd,bhmd->bhnm', q, k)
    attn = jax.nn.softmax(attn, axis=-1)
    out = jnp.einsum('bhnm,bhmd->bhnd', attn, v)              # (B, h, N, dh)
    out = out.transpose(0, 1, 3, 2).reshape(B, inner, N)      # (B, inner, N)
    y = jnp.einsum('oc,bcn->bon', wout, out) + bout.reshape(1, C, 1)
    return y.reshape(B, C, T, H, W)


if __name__ == "__main__":
    B, dim, heads = 2, 32, 4
    dim_head = dim // heads          # 8  (inner_dim == dim, as UniFormer uses)
    T, H, W = 2, 4, 4
    inner = heads * dim_head

    key = jax.random.PRNGKey(0)
    kx, kq, ko, kb, kg, kbt = jax.random.split(key, 6)

    x = jax.random.normal(kx, (B, dim, T, H, W), dtype=jnp.float32)

    # Deterministic parameter init (shapes from the module's __init__).
    gamma = 1.0 + 0.1 * jax.random.normal(kg, (dim,), jnp.float32)      # LN weight
    beta = 0.1 * jax.random.normal(kbt, (dim,), jnp.float32)            # LN bias
    wqkv = 0.1 * jax.random.normal(kq, (3 * inner, dim), jnp.float32)   # Conv1d, no bias
    wout = 0.1 * jax.random.normal(ko, (dim, inner), jnp.float32)       # Conv1d weight
    bout = 0.1 * jax.random.normal(kb, (dim,), jnp.float32)             # Conv1d bias
    params = (gamma, beta, wqkv, wout, bout)

    y = global_aggr(x, params, heads, dim_head)
    y = jax.block_until_ready(y)

    y_ref = global_aggr_ref(x, params, heads, dim_head)
    assert y.shape == (B, dim, T, H, W)
    # bf16 MXU operands (f32 accumulation) -> looser tolerance than pure f32.
    max_err = jnp.max(jnp.abs(y - y_ref))
    assert jnp.allclose(y, y_ref, atol=2e-2, rtol=2e-2), f"max err {max_err}"

    print("KERNEL_OK")
</pallas_src>

<mosaic_0001>
module attributes {stable_mosaic.version = 11 : i64} {
  func.func @kernel(%arg0: i32, %arg1: i32, %arg2: memref<1x32x32xf32, #tpu.memory_space<vmem>>, %arg3: memref<1x32xf32, #tpu.memory_space<vmem>>, %arg4: memref<1x32xf32, #tpu.memory_space<vmem>>, %arg5: memref<1x32x24xbf16, #tpu.memory_space<vmem>>, %arg6: memref<1x8x32xbf16, #tpu.memory_space<vmem>>, %arg7: memref<1x32xf32, #tpu.memory_space<vmem>>, %arg8: memref<1x32x32xf32, #tpu.memory_space<vmem>>, %arg9: memref<32x32xbf16, #tpu.memory_space<vmem>>, %arg10: memref<32x32xf32, #tpu.memory_space<vmem>>) attributes {dimension_semantics = [#tpu.dimension_semantics<parallel>, #tpu.dimension_semantics<arbitrary>], iteration_bounds = array<i64: 2, 4>, scalar_prefetch = 0 : i64, scratch_operands = 2 : i64, tpu.core_type = #tpu.core_type<tc>, window_params = [{transform_indices = @transform_0, window_bounds = array<i64: 1, 32, 32>}, {pipeline_mode = #tpu.pipeline_mode<synchronous>, transform_indices = @transform_1, window_bounds = array<i64: 1, 32>}, {pipeline_mode = #tpu.pipeline_mode<synchronous>, transform_indices = @transform_2, window_bounds = array<i64: 1, 32>}, {transform_indices = @transform_3, window_bounds = array<i64: 1, 32, 24>}, {transform_indices = @transform_4, window_bounds = array<i64: 1, 8, 32>}, {pipeline_mode = #tpu.pipeline_mode<synchronous>, transform_indices = @transform_5, window_bounds = array<i64: 1, 32>}, {transform_indices = @transform_6, window_bounds = array<i64: 1, 32, 32>}]} {
    %c0_i32 = arith.constant 0 : i32
    %0 = arith.cmpi eq, %arg1, %c0_i32 : i32
    %1 = arith.extui %0 : i1 to i32
    %c0_i32_0 = arith.constant 0 : i32
    %2 = arith.cmpi ne, %1, %c0_i32_0 : i32
    scf.if %2 {
      %c0_18 = arith.constant 0 : index
      %c0_19 = arith.constant 0 : index
      %c0_20 = arith.constant 0 : index
      %36 = vector.load %arg2[%c0_18, %c0_19, %c0_20] : memref<1x32x32xf32, #tpu.memory_space<vmem>>, vector<1x32x32xf32>
      %37 = vector.shape_cast %36 : vector<1x32x32xf32> to vector<32x32xf32>
      %cst_21 = arith.constant dense<0.000000e+00> : vector<32xf32>
      %38 = vector.multi_reduction <add>, %37, %cst_21 [0] : vector<32x32xf32> to vector<32xf32>
      %39 = vector.shape_cast %38 : vector<32xf32> to vector<1x32xf32>
      %cst_22 = arith.constant 3.200000e+01 : f32
      %40 = vector.broadcast %cst_22 : f32 to vector<1x32xf32>
      %41 = arith.divf %39, %40 : vector<1x32xf32>
      %42 = vector.broadcast %41 : vector<1x32xf32> to vector<32x32xf32>
      %43 = arith.subf %37, %42 : vector<32x32xf32>
      %44 = arith.mulf %43, %43 : vector<32x32xf32>
      %cst_23 = arith.constant dense<0.000000e+00> : vector<32xf32>
      %45 = vector.multi_reduction <add>, %44, %cst_23 [0] : vector<32x32xf32> to vector<32xf32>
      %46 = vector.shape_cast %45 : vector<32xf32> to vector<1x32xf32>
      %cst_24 = arith.constant 3.200000e+01 : f32
      %47 = vector.broadcast %cst_24 : f32 to vector<1x32xf32>
      %48 = arith.divf %46, %47 : vector<1x32xf32>
      %49 = vector.broadcast %41 : vector<1x32xf32> to vector<32x32xf32>
      %50 = arith.subf %37, %49 : vector<32x32xf32>
      %51 = math.sqrt %48 : vector<1x32xf32>
      %cst_25 = arith.constant 9.99999974E-6 : f32
      %52 = vector.broadcast %cst_25 : f32 to vector<1x32xf32>
      %53 = arith.addf %51, %52 : vector<1x32xf32>
      %54 = vector.broadcast %53 : vector<1x32xf32> to vector<32x32xf32>
      %55 = arith.divf %50, %54 : vector<32x32xf32>
      %56 = tpu.transpose %55, [1, 0] : vector<32x32xf32> -> vector<32x32xf32>
      %c0_26 = arith.constant 0 : index
      %c0_27 = arith.constant 0 : index
      %57 = vector.load %arg3[%c0_26, %c0_27] : memref<1x32xf32, #tpu.memory_space<vmem>>, vector<1x32xf32>
      %58 = vector.broadcast %57 : vector<1x32xf32> to vector<32x32xf32>
      %59 = arith.mulf %56, %58 : vector<32x32xf32>
      %c0_28 = arith.constant 0 : index
      %c0_29 = arith.constant 0 : index
      %60 = vector.load %arg4[%c0_28, %c0_29] : memref<1x32xf32, #tpu.memory_space<vmem>>, vector<1x32xf32>
      %61 = vector.broadcast %60 : vector<1x32xf32> to vector<32x32xf32>
      %62 = arith.addf %59, %61 : vector<32x32xf32>
      %63 = arith.truncf %62 : vector<32x32xf32> to vector<32x32xbf16>
      %c0_30 = arith.constant 0 : index
      %c0_31 = arith.constant 0 : index
      %64 = vector.load %arg9[%c0_30, %c0_31] : memref<32x32xbf16, #tpu.memory_space<vmem>>, vector<32x32xbf16>
      tpu.vector_store %arg9[%c0_30, %c0_31], %63 {strides = array<i32>} : memref<32x32xbf16, #tpu.memory_space<vmem>>, vector<32x32xbf16>,
      %cst_32 = arith.constant 0.000000e+00 : f32
      %65 = vector.broadcast %cst_32 : f32 to vector<32x32xf32>
      %c0_33 = arith.constant 0 : index
      %c0_34 = arith.constant 0 : index
      %66 = vector.load %arg10[%c0_33, %c0_34] : memref<32x32xf32, #tpu.memory_space<vmem>>, vector<32x32xf32>
      tpu.vector_store %arg10[%c0_33, %c0_34], %65 {strides = array<i32>} : memref<32x32xf32, #tpu.memory_space<vmem>>, vector<32x32xf32>,
    } else {
    }
    %c0 = arith.constant 0 : index
    %c0_1 = arith.constant 0 : index
    %3 = vector.load %arg9[%c0, %c0_1] : memref<32x32xbf16, #tpu.memory_space<vmem>>, vector<32x32xbf16>
    %c0_2 = arith.constant 0 : index
    %c0_3 = arith.constant 0 : index
    %c0_4 = arith.constant 0 : index
    %4 = vector.load %arg5[%c0_2, %c0_3, %c0_4] : memref<1x32x24xbf16, #tpu.memory_space<vmem>>, vector<1x32x24xbf16>
    %5 = vector.shape_cast %4 : vector<1x32x24xbf16> to vector<32x24xbf16>
    %cst = arith.constant dense<0.000000e+00> : vector<32x24xf32>
    %6 = tpu.matmul %3, %5, %cst {dimension_numbers = #tpu.dot_dimension_numbers<[1], [0], [0], [1], [0, 0, 1, 1], [], []>} : vector<32x32xbf16>, vector<32x24xbf16>, vector<32x24xf32> -> vector<32x24xf32>
    %7 = vector.extract_strided_slice %6 {offsets = [0, 0], sizes = [32, 8], strides = [1, 1]} : vector<32x24xf32> to vector<32x8xf32>
    %8 = arith.truncf %7 : vector<32x8xf32> to vector<32x8xbf16>
    %9 = vector.extract_strided_slice %6 {offsets = [0, 8], sizes = [32, 8], strides = [1, 1]} : vector<32x24xf32> to vector<32x8xf32>
    %10 = arith.truncf %9 : vector<32x8xf32> to vector<32x8xbf16>
    %11 = vector.extract_strided_slice %6 {offsets = [0, 16], sizes = [32, 8], strides = [1, 1]} : vector<32x24xf32> to vector<32x8xf32>
    %12 = arith.truncf %11 : vector<32x8xf32> to vector<32x8xbf16>
    "tpu.trace_start"() <{level = 10 : i32, message = "nd,md->nm"}> : () -> ()
    %cst_5 = arith.constant dense<0.000000e+00> : vector<32x32xf32>
    %13 = tpu.matmul %8, %10, %cst_5 {dimension_numbers = #tpu.dot_dimension_numbers<[1], [1], [0], [0], [0, 0, 1, 0], [], []>} : vector<32x8xbf16>, vector<32x8xbf16>, vector<32x32xf32> -> vector<32x32xf32>
    "tpu.trace_stop"() : () -> ()
    %cst_6 = arith.constant dense<0xFF800000> : vector<32xf32>
    %14 = vector.multi_reduction <maximumf>, %13, %cst_6 [1] : vector<32x32xf32> to vector<32xf32>
    %15 = vector.shape_cast %14 : vector<32xf32> to vector<32x1xf32>
    %16 = vector.broadcast %15 : vector<32x1xf32> to vector<32x32xf32>
    %17 = arith.subf %13, %16 : vector<32x32xf32>
    %18 = math.exp %17 : vector<32x32xf32>
    %cst_7 = arith.constant dense<0.000000e+00> : vector<32xf32>
    %19 = vector.multi_reduction <add>, %18, %cst_7 [1] : vector<32x32xf32> to vector<32xf32>
    %20 = vector.shape_cast %19 : vector<32xf32> to vector<32x1xf32>
    %21 = tpu.reciprocal %20 {approx = true} : vector<32x1xf32> -> vector<32x1xf32>
    %22 = vector.broadcast %21 : vector<32x1xf32> to vector<32x32xf32>
    %23 = arith.mulf %18, %22 : vector<32x32xf32>
    %24 = arith.truncf %23 : vector<32x32xf32> to vector<32x32xbf16>
    %cst_8 = arith.constant dense<0.000000e+00> : vector<32x8xf32>
    %25 = tpu.matmul %24, %12, %cst_8 {dimension_numbers = #tpu.dot_dimension_numbers<[1], [0], [0], [1], [0, 0, 1, 1], [], []>} : vector<32x32xbf16>, vector<32x8xbf16>, vector<32x8xf32> -> vector<32x8xf32>
    %c0_9 = arith.constant 0 : index
    %c0_10 = arith.constant 0 : index
    %26 = vector.load %arg10[%c0_9, %c0_10] : memref<32x32xf32, #tpu.memory_space<vmem>>, vector<32x32xf32>
    %27 = arith.truncf %25 : vector<32x8xf32> to vector<32x8xbf16>
    %c0_11 = arith.constant 0 : index
    %c0_12 = arith.constant 0 : index
    %c0_13 = arith.constant 0 : index
    %28 = vector.load %arg6[%c0_11, %c0_12, %c0_13] : memref<1x8x32xbf16, #tpu.memory_space<vmem>>, vector<1x8x32xbf16>
    %29 = vector.shape_cast %28 : vector<1x8x32xbf16> to vector<8x32xbf16>
    %cst_14 = arith.constant dense<0.000000e+00> : vector<32x32xf32>
    %30 = tpu.matmul %27, %29, %cst_14 {dimension_numbers = #tpu.dot_dimension_numbers<[1], [0], [0], [1], [0, 0, 1, 1], [], []>} : vector<32x8xbf16>, vector<8x32xbf16>, vector<32x32xf32> -> vector<32x32xf32>
    %31 = arith.addf %26, %30 : vector<32x32xf32>
    %c0_15 = arith.constant 0 : index
    %c0_16 = arith.constant 0 : index
    %32 = vector.load %arg10[%c0_15, %c0_16] : memref<32x32xf32, #tpu.memory_space<vmem>>, vector<32x32xf32>
    tpu.vector_store %arg10[%c0_15, %c0_16], %31 {strides = array<i32>} : memref<32x32xf32, #tpu.memory_space<vmem>>, vector<32x32xf32>,
    %c3_i32 = arith.constant 3 : i32
    %33 = arith.cmpi eq, %arg1, %c3_i32 : i32
    %34 = arith.extui %33 : i1 to i32
    %c0_i32_17 = arith.constant 0 : i32
    %35 = arith.cmpi ne, %34, %c0_i32_17 : i32
    scf.if %35 {
      %c0_18 = arith.constant 0 : index
      %c0_19 = arith.constant 0 : index
      %36 = vector.load %arg10[%c0_18, %c0_19] : memref<32x32xf32, #tpu.memory_space<vmem>>, vector<32x32xf32>
      %c0_20 = arith.constant 0 : index
      %c0_21 = arith.constant 0 : index
      %37 = vector.load %arg7[%c0_20, %c0_21] : memref<1x32xf32, #tpu.memory_space<vmem>>, vector<1x32xf32>
      %38 = vector.broadcast %37 : vector<1x32xf32> to vector<32x32xf32>
      %39 = arith.addf %36, %38 : vector<32x32xf32>
      %40 = tpu.transpose %39, [1, 0] : vector<32x32xf32> -> vector<32x32xf32>
      %c0_22 = arith.constant 0 : index
      %c0_23 = arith.constant 0 : index
      %c0_24 = arith.constant 0 : index
      %41 = vector.load %arg8[%c0_22, %c0_23, %c0_24] : memref<1x32x32xf32, #tpu.memory_space<vmem>>, vector<1x32x32xf32>
      %42 = vector.shape_cast %41 : vector<1x32x32xf32> to vector<32x32xf32>
      %43 = vector.shape_cast %40 : vector<32x32xf32> to vector<1x32x32xf32>
      tpu.vector_store %arg8[%c0_22, %c0_23, %c0_24], %43 {strides = array<i32>} : memref<1x32x32xf32, #tpu.memory_space<vmem>>, vector<1x32x32xf32>,
    } else {
    }
    return
  }
  func.func @transform_0(%arg0: i32, %arg1: i32) -> (i32, i32, i32) {
    %c0_i32 = arith.constant 0 : i32
    %c0_i32_0 = arith.constant 0 : i32
    %c0_i32_1 = arith.constant 0 : i32
    return %arg0, %c0_i32, %c0_i32_0 : i32, i32, i32
  }
  func.func @transform_1(%arg0: i32, %arg1: i32) -> (i32, i32) {
    %c0_i32 = arith.constant 0 : i32
    %c0_i32_0 = arith.constant 0 : i32
    %c0_i32_1 = arith.constant 0 : i32
    return %c0_i32, %c0_i32_0 : i32, i32
  }
  func.func @transform_2(%arg0: i32, %arg1: i32) -> (i32, i32) {
    %c0_i32 = arith.constant 0 : i32
    %c0_i32_0 = arith.constant 0 : i32
    %c0_i32_1 = arith.constant 0 : i32
    return %c0_i32, %c0_i32_0 : i32, i32
  }
  func.func @transform_3(%arg0: i32, %arg1: i32) -> (i32, i32, i32) {
    %c0_i32 = arith.constant 0 : i32
    %c0_i32_0 = arith.constant 0 : i32
    %c0_i32_1 = arith.constant 0 : i32
    return %arg1, %c0_i32, %c0_i32_0 : i32, i32, i32
  }
  func.func @transform_4(%arg0: i32, %arg1: i32) -> (i32, i32, i32) {
    %c0_i32 = arith.constant 0 : i32
    %c0_i32_0 = arith.constant 0 : i32
    %c0_i32_1 = arith.constant 0 : i32
    return %arg1, %c0_i32, %c0_i32_0 : i32, i32, i32
  }
  func.func @transform_5(%arg0: i32, %arg1: i32) -> (i32, i32) {
    %c0_i32 = arith.constant 0 : i32
    %c0_i32_0 = arith.constant 0 : i32
    %c0_i32_1 = arith.constant 0 : i32
    return %c0_i32, %c0_i32_0 : i32, i32
  }
  func.func @transform_6(%arg0: i32, %arg1: i32) -> (i32, i32, i32) {
    %c0_i32 = arith.constant 0 : i32
    %c0_i32_0 = arith.constant 0 : i32
    %c0_i32_1 = arith.constant 0 : i32
    return %arg0, %c0_i32, %c0_i32_0 : i32, i32, i32
  }
}

</mosaic_0001>

<bundles_post_ra>
// kernel: tpu_custom_call.1
= control target key start
LH: loop header
LB: loop body
LE: loop exit
PB: predicated region body
PF: predicated region fallthrough
CT: control target
= control target key end

     0   :  { %11 = vsyncpa [#allocation5], 0  ;;  %s1444_s0 = inlined_call_operand.vmem [shape: f32[2,32,32], index: 0, kind: input, shape index: {}]   ;;  %s1445_s1 = inlined_call_operand.vmem [shape: f32[1,32], index: 1, kind: input, shape index: {}]   ;;  %s1446_s2 = inlined_call_operand.vmem [shape: f32[1,32], index: 2, kind: input, shape index: {}]   ;;  %s1447_s3 = inlined_call_operand.vmem [shape: bf16[4,32,24], index: 3, kind: input, shape index: {}]   ;;  %s1448_s4 = inlined_call_operand.vmem [shape: bf16[4,8,32], index: 4, kind: input, shape index: {}]   ;;  %s1449_s5 = inlined_call_operand.vmem [shape: f32[1,32], index: 5, kind: input, shape index: {}]   ;;  %s1450_s6 = inlined_call_operand.hbm [shape: f32[2,32,32], index: 6, kind: output, shape index: {}]  }
   0x1   :  { %13 = vsyncpa [#allocation5 + $0x1], 0  ;;  %s1230_s21 = smov 0   ;;  %s1232_s22 = smov 0  }
   0x2   :  { %s1234_s23 = smov 0   ;;  %s1236_s24 = smov 0  }
   0x3   :  { %s1238_s25 = smov 0   ;;  %s1240_s26 = smov 0  }
   0x4   :  { %s1242_s27 = smov 0   ;;  %s1244_s28 = smov 0  }
   0x5 LB: > { %1455 = sst [smem:[#allocation7_spill]] %s1179_s26  ;;  %s912_s29 = sadd.s32 4294967295, %s1187_s28   ;;  %s1187_s28 = sphi %s1244_s28, %s19_s28   ;;  %s1183_s27 = sphi %s1242_s27, %s1467_s27   ;;  %s1179_s26 = sphi %s1240_s26, %s1466_s26   ;;  %s1175_s25 = sphi %s1238_s25, %s1465_s25   ;;  %s1171_s24 = sphi %s1236_s24, %s1464_s24   ;;  %s1167_s23 = sphi %s1234_s23, %s1470_s23   ;;  %s1163_s22 = sphi %s1232_s22, %s1469_s22   ;;  %s1159_s21 = sphi %s1230_s21, %s1468_s21  }
   0x6   : > { %1456 = sst [smem:[#allocation8_spill]] %s1183_s27  ;;  %s913_s30 = sadd.s32 4294967294, %s1187_s28  }
   0x7   : > { %s28_s7 = sadd.s32 1, %s1179_s26  ;;  %s31_s8 = sadd.s32 1, %s1183_s27 }
   0x8   : > { %p29_p0 = scmp.ge.s32.totalorder %s28_s7, 4  ;;  %p189_p1 = scmp.ne.s32.totalorder %s1167_s23, %s1163_s22 }
   0x9   : > { %p190_p2 = scmp.eq.s32.totalorder %s912_s29, 7  ;;  %p195_p4 = scmp.ne.s32.totalorder %s1163_s22, %s1159_s21 }
   0xa   : > { %s1472_s7 = smov (%p29_p0, %s28_s7), 0  ;;  %s1474_s8 = smov (!%p29_p0, %s31_s8), %s1183_s27 }
   0xb   : > { %1457 = sst [smem:[#allocation9_spill]] %s1472_s7  ;;  %p1279_p3 = por %p190_p2, %p189_p1 }
   0xc   : > { %p33_p5 = scmp.ge.s32.totalorder %s1474_s8, 2  ;;  %p196_p6 = scmp.eq.s32.totalorder %s913_s30, 7 }
   0xd   : > { %p916_p7 = scmp.ge.s32.totalorder %s1187_s28, 1  ;;  %p246_p8 = scmp.lt.s32.totalorder %s1187_s28, 9 }
   0xe   : > { %s1476_s8 = smov (%p33_p5, %s1474_s8), 0  ;;  %p1289_p9 = por %p196_p6, %p195_p4 }
   0xf   : > { %1459 = sst [smem:[#allocation10_spill]] %s1476_s8  ;;  %p247_p10 = pnand %p916_p7, %p246_p8 }
  0x10   : > { %s176_s11 = ssub.s32 %s1183_s27, %s1476_s8  ;;  %s179_s12 = sadd.s32 1, %s1167_s23 }
  0x11   : > { %p177_p11 = scmp.eq.s32.totalorder %s176_s11, 0  ;;  %250 = sbr.rel (%p247_p10) target bundleno = 1763 (0x6e3), region = 44 }
  0x12   : > { %s1454_s14 = sand.u32 (!%p247_p10), 1, %s1163_s22   ;;  %p285_p12 = scmp.lt.s32.totalorder (!%p247_p10), %s1175_s25, 1 }
  0x13   : > { %s1297_s13 = scalar_select %p177_p11, %s1167_s23, %s179_s12  }
  0x14   : > { %s917_s15 = sshll.u32 (!%p247_p10), %s1454_s14, 5  ;;  %p290_p13 = scmp.lt.s32.totalorder (!%p247_p10), %s1171_s24, 3 }
  0x15   : > { %1461 = sst [smem:[#allocation11_spill]] %s1297_s13  ;;  %s1319_s14 = scalar_lea.vmem (!%p247_p10), [#allocation4], %s917_s15 }
  0x16   : > { %p923_p0 = scmp.ne.s32.totalorder (!%p247_p10), %s1171_s24, 0 }
  0x18   : > { %s286_s16 = scalar_select %p285_p12, %s1175_s25, 1 }
  0x19   : > { %s291_s17 = scalar_select %p290_p13, %s1171_s24, 3 }
  0x1a   : > { %s943_s18 = sshll.u32 %s286_s16, 5  ;;  %303 = sbr.rel (%p923_p0) target bundleno = 253 (0xfd), region = 48  ;;  %vm308_vm0 = vcmask (!%p923_p0), 261120   ;;  %v1189_v7 = vmov (!%p923_p0), 0.0   ;;  %v924_v52 = vld [vmem:[%s1445_s1] ss:$0 sm:$0xff] (!%p923_p0) }
  0x1b   : > { %s289_s29 = scalar_lea.vmem %s1444_s0, %s943_s18  ;;  %s944_s30 = sshll.u32 %s291_s17, 4  ;;  %417 = vst.msk [vmem:[#allocation3] sm:$0xff] (!%p923_p0), %vm308_vm0, %v1189_v7  ;;  %418 = vst.msk [vmem:[#allocation3 + $0x8] sm:$0xff] (!%p923_p0), %vm308_vm0, %v1189_v7  ;;  %v925_v55 = vld [vmem:[%s1446_s2] ss:$0 sm:$0xff] (!%p923_p0) }
  0x1c   : > { %s1312_s8 = scalar_lea.vmem %s1447_s3, %s944_s30  ;;  %s922_s7 = sshll.u32 %s291_s17, 2  ;;  %v304_v0 = vld [vmem:[%s289_s29] sm:$0xff] (!%p923_p0)  ;;  %v305_v1 = vld [vmem:[%s289_s29 + $0x8] sm:$0xff] (!%p923_p0)  ;;  %v306_v2 = vld [vmem:[%s289_s29 + $0x10] sm:$0xff] (!%p923_p0)  ;;  %419 = vst.msk [vmem:[#allocation3 + $0x10] sm:$0xff] (!%p923_p0), %vm308_vm0, %v1189_v7 }
  0x1d   : > { %s1317_s13 = scalar_lea.vmem %s1448_s4, %s922_s7  ;;  %v307_v3 = vld [vmem:[%s289_s29 + $0x18] sm:$0xff] (!%p923_p0)  ;;  %v309_v4 = vsel (!%p923_p0), %vm308_vm0, %v304_v0, 0.0  ;;  %v310_v5 = vsel (!%p923_p0), %vm308_vm0, %v305_v1, 0.0  ;;  %v312_v6 = vsel (!%p923_p0), %vm308_vm0, %v306_v2, 0.0  ;;  %420 = vst.msk [vmem:[#allocation3 + $0x18] sm:$0xff] (!%p923_p0), %vm308_vm0, %v1189_v7 }
  0x1e   : > { %v311_v8 = vadd.f32 (!%p923_p0), %v310_v5, %v309_v4  ;;  %v314_v9 = vsel (!%p923_p0), %vm308_vm0, %v307_v3, 0.0 }
  0x20   : > { %v313_v10 = vadd.f32 (!%p923_p0), %v312_v6, %v311_v8 }
  0x22   : > { %v315_v11 = vadd.f32 %v314_v9, %v313_v10 }
  0x24   : > { %v316_v12 = vrot.slane %v315_v11, 4 }
  0x26   : > { %v317_v13 = vadd.f32 %v316_v12, %v315_v11 }
  0x28   : > { %v318_v14 = vrot.slane %v317_v13, 2 }
  0x2a   : > { %v319_v15 = vadd.f32 %v318_v14, %v317_v13 }
  0x2c   : > { %v320_v16 = vrot.slane %v319_v15, 1 }
  0x2e   : > { %v321_v17 = vadd.f32 %v320_v16, %v319_v15 }
  0x30   : > { %v323_v18 = vmul.f32 0.03125, %v321_v17 }
  0x32   : > { %v324_v19 = vsub.f32 %v304_v0, %v323_v18  ;;  %v325_v20 = vsub.f32 %v305_v1, %v323_v18  ;;  %v326_v21 = vsub.f32 %v306_v2, %v323_v18  ;;  %v327_v22 = vsub.f32 %v307_v3, %v323_v18 }
  0x34   : > { %v328_v23 = vmul.f32 %v324_v19, %v324_v19  ;;  %v329_v24 = vmul.f32 %v325_v20, %v325_v20  ;;  %v330_v25 = vmul.f32 %v326_v21, %v326_v21  ;;  %v331_v26 = vmul.f32 %v327_v22, %v327_v22 }
  0x36   : > { %v332_v27 = vsel %vm308_vm0, %v328_v23, 0.0  ;;  %v333_v28 = vsel %vm308_vm0, %v329_v24, 0.0  ;;  %v335_v29 = vsel %vm308_vm0, %v330_v25, 0.0  ;;  %v337_v31 = vsel %vm308_vm0, %v331_v26, 0.0 }
  0x37   : > { %v334_v30 = vadd.f32 %v333_v28, %v332_v27 }
  0x39   : > { %v336_v32 = vadd.f32 %v335_v29, %v334_v30 }
  0x3b   : > { %v338_v33 = vadd.f32 %v337_v31, %v336_v32 }
  0x3d   : > { %v339_v34 = vrot.slane %v338_v33, 4 }
  0x3f   : > { %v340_v35 = vadd.f32 %v339_v34, %v338_v33 }
  0x41   : > { %v341_v36 = vrot.slane %v340_v35, 2 }
  0x43   : > { %v342_v37 = vadd.f32 %v341_v36, %v340_v35 }
  0x45   : > { %v343_v38 = vrot.slane %v342_v37, 1 }
  0x47   : > { %v344_v39 = vadd.f32 %v343_v38, %v342_v37 }
  0x49   : > { %v345_v40 = vmul.f32 0.03125, %v344_v39 }
  0x4b   : > { %1071 = vrsqrt.f32 %v345_v40  ;;  %vm348_vm1 = vcmp.eq.f32.partialorder %v345_v40, inf  ;;  %v351_v42 = vand.u32 2147483648, %v345_v40  ;;  %vm350_vm2 = vcmp.eq.f32.partialorder %v345_v40, 0.0 }
  0x55   : > { %v1072_v41 = vpop.eup %1071 }
  0x56   : > { %v347_v43 = vmul.f32 %v1072_v41, %v345_v40 }
  0x58   : > { %v349_v44 = vsel %vm348_vm1, %v345_v40, %v347_v43 }
  0x59   : > { %v352_v45 = vsel %vm350_vm2, %v351_v42, %v349_v44 }
  0x5a   : > { %v353_v46 = vadd.f32 1e-05, %v352_v45 }
  0x5c   : > { %1073 = vrcp.f32 %v353_v46 }
  0x66   : > { %v1074_v47 = vpop.eup %1073 }
  0x67   : > { %v355_v48 = vmul.f32 %v1074_v47, %v324_v19  ;;  %v356_v49 = vmul.f32 %v1074_v47, %v325_v20  ;;  %v357_v50 = vmul.f32 %v1074_v47, %v326_v21  ;;  %v358_v51 = vmul.f32 %v1074_v47, %v327_v22 }
  0x69   : > { %359 = vxpose.xlu0.b32.start [1/4] (short) (narrow) %v355_v48, 32 }
  0x6d   : > { %360 = vxpose.xlu0.b32.cont [2/4] (short) (narrow) %v356_v49, 32 }
  0x71   : > { %361 = vxpose.xlu0.b32.cont [3/4] (short) (narrow) %v357_v50, 32 }
  0x75   : > { %362 = vxpose.xlu0.b32.end [4/4] (short) (narrow) %v358_v51, 32 }
  0xe9   : > { %v375_v53 = vpop.trf.xlu0 }
  0xea   : > { %v398_v54 = vmul.f32 %v924_v52, %v375_v53 }
  0xec   : > { %v409_v58 = vadd.f32 %v925_v55, %v398_v54 }
  0xed   : > { %v376_v56 = vpop.trf.xlu0 }
  0xee   : > { %v399_v57 = vmul.f32 %v924_v52, %v376_v56 }
  0xf0   : > { %v410_v59 = vadd.f32 %v925_v55, %v399_v57 }
  0xf1   : > { %v377_v60 = vpop.trf.xlu0 }
  0xf2   : > { %v413_v61 = vpack.c.bf16 %v410_v59, %v409_v58  ;;  %v400_v62 = vmul.f32 %v924_v52, %v377_v60 }
  0xf4   : > { %415 = vst.msk [vmem:[#allocation2] sm:$0xff] %vm308_vm0, %v413_v61  ;;  %v411_v1 = vadd.f32 %v925_v55, %v400_v62 }
  0xf5   : > { %v378_v63 = vpop.trf.xlu0 }
  0xf6   : > { %v401_v0 = vmul.f32 %v924_v52, %v378_v63 }
  0xf8   : > { %v412_v2 = vadd.f32 %v925_v55, %v401_v0 }
  0xfa   : > { %v414_v3 = vpack.c.bf16 %v412_v2, %v411_v1 }
  0xfc   : > { %416 = vst.msk [vmem:[#allocation2 + $0x8] sm:$0xff] %vm308_vm0, %v414_v3 }
  0xfd PF: > { %v1075_v4 = vld [vmem:[%s1312_s8] sm:$0xff]   ;;  %vm439_vm3 = vcmask 261120   ;;  %v1076_v5 = vld [vmem:[%s1312_s8 + $0x8] sm:$0xff]   ;;  %vm503_vm4 = vcmask 64512   ;;  %s1190_s16 = smov 120   ;;  %s1191_s8 = smov 112  }
  0xfe   : > { %961 = vmatprep.subr.bf16.mxu0 %v1075_v4  ;;  %v421_v6 = vld [vmem:[#allocation2] sm:$0xff]  ;;  %vm685_vm5 = vcmask 1043456   ;;  %p936_p1 = scmp.ne.s32.totalorder %s1171_s24, 3 }
  0xff   : > { %962 = vmatpush3.bf16.msra.mxu0 %v1075_v4  ;;  %965 = vmatprep.mubr.msk.bf16.mxu0 %vm439_vm3, %v421_v6  ;;  %v678_v53 = vld [vmem:[%s1317_s13] sm:$0xf] }
 0x100   : > { %963 = vmatprep.subr.bf16.mxu0 %v1076_v5  ;;  %v687_v63 = vsel %vm685_vm5, %v678_v53, 0  ;;  %v674_v6 = vld [vmem:[#allocation3 + $0x10] sm:$0xff] }
 0x103   : > { %964 = vmatpush3.bf16.msra.mxu0 %v1076_v5  ;;  %v422_v7 = vld [vmem:[#allocation2 + $0x8] sm:$0xff] }
 0x106   : > { %966 = vmatmul.mubr.msk.bf16.vlgmr.msra.gmra.mrb[0].mxu0 %vm439_vm3, %v422_v7  ;;  %v672_v7 = vld [vmem:[#allocation3] sm:$0xff] }
 0x1d9   : > { %v967_v8 = vpop.f32.mrb[0].mxu0 }
 0x1da   : > { %v480_v9 = vpop.f32.mrb[1].mxu0 }
 0x1db   : > { %v968_v10 = vpop.f32.mrb[2].mxu0 }
 0x1dc   : > { %v496_v11 = vpack.c.bf16 %v968_v10, %v967_v8  ;;  %v483_v12 = vpop.f32.mrb[3].mxu0 }
 0x1dd   : > { %v495_v13 = vpack.c.bf16 %v483_v12, %v480_v9  ;;  %v675_v9 = vld [vmem:[#allocation3 + $0x18] sm:$0xff]  ;;  %v673_v12 = vld [vmem:[#allocation3 + $0x8] sm:$0xff] }
 0x1df   : > { %499 = vrot.lane.b32.xlu0 %v495_v13, %s1190_s16  ;;  %973 = vmatprep.mubr.msk.bf16.mxu1 %vm503_vm4, %v495_v13 }
 0x1e3   : > { %501 = vrot.lane.b32.xlu0 %v496_v11, %s1190_s16 }
 0x251   : > { %v500_v14 = vpop.permute.xlu0 %499 }
 0x252   : > { %991 = vmatprep.subr.msk.bf16.mxu1 %vm503_vm4, %v500_v14  ;;  %v511_v15 = vsel %vm503_vm4, %v500_v14, 0 }
 0x253   : > { %970 = vmatpush3.bf16.xpose.msra.mxu1 %v511_v15 }
 0x255   : > { %v502_v16 = vpop.permute.xlu0 %501 }
 0x256   : > { %992 = vmatprep.subr.msk.bf16.mxu1 %vm503_vm4, %v502_v16  ;;  %v514_v17 = vsel %vm503_vm4, %v502_v16, 0 }
 0x25b   : > { %972 = vmatpush3.bf16.xpose.msra.mxu1 %v514_v17 }
 0x262   : > { %974 = vmatmul.mubr.msk.bf16.vlgmr.msra.gmra.mrb[0].mxu1 %vm503_vm4, %v496_v11 }
 0x335   : > { %v975_v18 = vpop.f32.mrb[0].mxu1 }
 0x336   : > { %v550_v19 = vpop.f32.mrb[1].mxu1  ;;  %v571_v20 = vsel %vm439_vm3, %v975_v18, -inf }
 0x337   : > { %572 = vmax.xlane.f32.xlu0 %v571_v20  ;;  %v976_v21 = vpop.f32.mrb[2].mxu1  ;;  %v565_v22 = vsel %vm439_vm3, %v550_v19, -inf }
 0x338   : > { %566 = vmax.xlane.f32.xlu1 %v565_v22  ;;  %v553_v23 = vpop.f32.mrb[3].mxu1  ;;  %v574_v25 = vsel %vm439_vm3, %v976_v21, -inf }
 0x339   : > { %v568_v24 = vsel %vm439_vm3, %v553_v23, -inf }
 0x33c   : > { %569 = vmax.xlane.f32.xlu1 %v568_v24 }
 0x340   : > { %575 = vmax.xlane.f32.xlu1 %v574_v25 }
 0x34d   : > { %613 = vrot.lane.b32.xlu0 %v496_v11, %s1191_s8 }
 0x3c4   : > { %v573_v26 = vpop.xlane.xlu0 %572 }
 0x3c5   : > { %v579_v27 = vsub.f32 %v975_v18, %v573_v26  ;;  %v567_v28 = vpop.xlane.xlu1 %566 }
 0x3c6   : > { %v577_v29 = vsub.f32 %v550_v19, %v567_v28  ;;  %v937_v19 = vld [vmem:[%s1449_s5] ss:$0 sm:$0xff] (!%p936_p1) }
 0x3c7   : > { %v585_v30 = vmul.f32 1.442695, %v579_v27 }
 0x3c8   : > { %v581_v31 = vmul.f32 1.442695, %v577_v29  ;;  %v614_v51 = vpop.permute.xlu0 %613 }
 0x3c9   : > { %1077 = vpow2.f32 %v585_v30  ;;  %v570_v32 = vpop.xlane.xlu1 %569 }
 0x3ca   : > { %1079 = vpow2.f32 %v581_v31  ;;  %v578_v33 = vsub.f32 %v553_v23, %v570_v32 }
 0x3cc   : > { %v583_v36 = vmul.f32 1.442695, %v578_v33 }
 0x3cd   : > { %v576_v34 = vpop.xlane.xlu1 %575 }
 0x3ce   : > { %v580_v35 = vsub.f32 %v976_v21, %v576_v34 }
 0x3d0   : > { %v587_v37 = vmul.f32 1.442695, %v580_v35 }
 0x3d2   : > { %1081 = vpow2.f32 %v587_v37 }
 0x3d3   : > { %v1078_v38 = vpop.eup %1077  ;;  %1083 = vpow2.f32 %v583_v36 }
 0x3d4   : > { %v595_v39 = vsel %vm439_vm3, %v1078_v38, 0.0  ;;  %v1080_v40 = vpop.eup %1079 }
 0x3d5   : > { %596 = vadd.xlane.f32.xlu1 %v595_v39  ;;  %v589_v41 = vsel %vm439_vm3, %v1080_v40, 0.0 }
 0x3d9   : > { %590 = vadd.xlane.f32.xlu1 %v589_v41 }
 0x3dc   : > { %v1082_v42 = vpop.eup %1081 }
 0x3dd   : > { %v598_v43 = vsel %vm439_vm3, %v1082_v42, 0.0  ;;  %v1084_v44 = vpop.eup %1083 }
 0x3de   : > { %599 = vadd.xlane.f32.xlu1 %v598_v43  ;;  %v592_v45 = vsel %vm439_vm3, %v1084_v44, 0.0 }
 0x3e2   : > { %593 = vadd.xlane.f32.xlu1 %v592_v45 }
 0x3f3   : > { %611 = vrot.lane.b32.xlu1 %v495_v13, %s1191_s8 }
 0x462   : > { %v597_v46 = vpop.xlane.xlu1 %596 }
 0x466   : > { %v591_v47 = vpop.xlane.xlu1 %590 }
 0x46b   : > { %v600_v48 = vpop.xlane.xlu1 %599 }
 0x46c   : > { %1085 = vrcp.f32 %v600_v48 }
 0x46d   : > { %1087 = vrcp.f32 %v591_v47 }
 0x46e   : > { %1089 = vrcp.f32 %v597_v46 }
 0x46f   : > { %v594_v49 = vpop.xlane.xlu1 %593 }
 0x470   : > { %1091 = vrcp.f32 %v594_v49 }
 0x473   : > { %v612_v50 = vpop.permute.xlu1 %611 }
 0x474   : > { %977 = vmatprep.subr.bf16.mxu0 %v612_v50 }
 0x475   : > { %978 = vmatpush3.bf16.msra.mxu0 %v612_v50 }
 0x476   : > { %979 = vmatprep.subr.bf16.mxu0 %v614_v51  ;;  %v1086_v52 = vpop.eup %1085 }
 0x477   : > { %v1088_v54 = vpop.eup %1087  ;;  %v608_v57 = vmul.f32 %v1086_v52, %v1082_v42 }
 0x478   : > { %v1090_v55 = vpop.eup %1089  ;;  %v605_v58 = vmul.f32 %v1088_v54, %v1080_v40 }
 0x479   : > { %980 = vmatpush3.bf16.msra.mxu0 %v614_v51  ;;  %v607_v60 = vmul.f32 %v1090_v55, %v1078_v38 }
 0x47a   : > { %v1092_v56 = vpop.eup %1091  ;;  %993 = vmatprep.subr.msk.bf16.mxu0 %vm685_vm5, %v678_v53 }
 0x47b   : > { %v606_v59 = vmul.f32 %v1092_v56, %v1084_v44  ;;  %v610_v62 = vpack.c.bf16 %v608_v57, %v607_v60 }
 0x47d   : > { %v609_v61 = vpack.c.bf16 %v606_v59, %v605_v58 }
 0x47f   : > { %981 = vmatprep.mubr.msk.bf16.mxu0 %vm439_vm3, %v609_v61 }
 0x480   : > { %982 = vmatmul.mubr.msk.bf16.vlgmr.msra.gmra.mrb[4].mxu0 %vm439_vm3, %v610_v62 }
 0x481   : > { %986 = vmatpush3.bf16.msra.mxu0 %v687_v63 }
 0x553   : > { %v983_v0 = vpop.f32.mrb[4].mxu0 }
 0x554   : > { %v657_v1 = vpop.f32.mrb[5].mxu0 }
 0x555   : > { %v984_v2 = vpop.f32.mrb[6].mxu0 }
 0x556   : > { %v677_v3 = vpack.c.bf16 %v984_v2, %v983_v0  ;;  %v660_v4 = vpop.f32.mrb[7].mxu0 }
 0x557   : > { %v676_v5 = vpack.c.bf16 %v660_v4, %v657_v1 }
 0x559   : > { %987 = vmatprep.mubr.msk.bf16.mxu0 %vm503_vm4, %v676_v5 }
 0x55a   : > { %988 = vmatmul.mubr.msk.bf16.vlgmr.msra.gmra.mrb[8].mxu0 %vm503_vm4, %v677_v3 }
 0x62d   : > { %v989_v8 = vpop.f32.mrb[8].mxu0  ;;  %749 = sbr.rel (%p936_p1) target bundleno = 1737 (0x6c9), region = 52 }
 0x62e   : > { %v740_v10 = vadd.f32 %v989_v8, %v674_v6  ;;  %v723_v11 = vpop.f32.mrb[9].mxu0 }
 0x62f   : > { %v738_v13 = vadd.f32 %v723_v11, %v672_v7  ;;  %v990_v14 = vpop.f32.mrb[10].mxu0 }
 0x630   : > { %744 = vst.msk [vmem:[#allocation3 + $0x10] sm:$0xff] %vm439_vm3, %v740_v10  ;;  %v741_v15 = vadd.f32 %v990_v14, %v675_v9  ;;  %v726_v16 = vpop.f32.mrb[11].mxu0 }
 0x631   : > { %742 = vst.msk [vmem:[#allocation3] sm:$0xff] %vm439_vm3, %v738_v13  ;;  %v739_v17 = vadd.f32 %v726_v16, %v673_v12 }
 0x632   : > { %745 = vst.msk [vmem:[#allocation3 + $0x18] sm:$0xff] %vm439_vm3, %v741_v15 }
 0x633   : > { %743 = vst.msk [vmem:[#allocation3 + $0x8] sm:$0xff] %vm439_vm3, %v739_v17 }
 0x637   : > { %v752_v23 = vld [vmem:[#allocation3 + $0x10] sm:$0xff] }
 0x638   : > { %v750_v18 = vld [vmem:[#allocation3] sm:$0xff]  ;;  %v763_v24 = vadd.f32 %v937_v19, %v752_v23 }
 0x639   : > { %v761_v21 = vadd.f32 %v937_v19, %v750_v18  ;;  %v753_v25 = vld [vmem:[#allocation3 + $0x18] sm:$0xff] }
 0x63a   : > { %v751_v20 = vld [vmem:[#allocation3 + $0x8] sm:$0xff]  ;;  %v764_v26 = vadd.f32 %v937_v19, %v753_v25 }
 0x63b   : > { %765 = vxpose.xlu0.b32.start [1/4] (short) (narrow) %v761_v21, 32  ;;  %v762_v22 = vadd.f32 %v937_v19, %v751_v20 }
 0x63f   : > { %766 = vxpose.xlu0.b32.cont [2/4] (short) (narrow) %v762_v22, 32 }
 0x643   : > { %767 = vxpose.xlu0.b32.cont [3/4] (short) (narrow) %v763_v24, 32 }
 0x647   : > { %768 = vxpose.xlu0.b32.end [4/4] (short) (narrow) %v764_v26, 32 }
 0x6bb   : > { %v781_v27 = vpop.trf.xlu0 }
 0x6bc   : > { %797 = vst.msk [vmem:[%s1319_s14] sm:$0xff] %vm439_vm3, %v781_v27 }
 0x6bf   : > { %v782_v28 = vpop.trf.xlu0 }
 0x6c0   : > { %798 = vst.msk [vmem:[%s1319_s14 + $0x8] sm:$0xff] %vm439_vm3, %v782_v28 }
 0x6c3   : > { %v783_v29 = vpop.trf.xlu0 }
 0x6c4   : > { %799 = vst.msk [vmem:[%s1319_s14 + $0x10] sm:$0xff] %vm439_vm3, %v783_v29 }
 0x6c7   : > { %v784_v30 = vpop.trf.xlu0 }
 0x6c8   : > { %800 = vst.msk [vmem:[%s1319_s14 + $0x18] sm:$0xff] %vm439_vm3, %v784_v30 }
 0x6c9 PF: > { %s945_s24 = sshll.u32 %s1175_s25, 9  ;;  %s815_s29 = sshll.u32 %s1319_s14, 4  ;;  %s1388_s29 = int_to_ptr.vmem [resolvable:$true] %s815_s29 }
 0x6ca   : > { %s1385_s20 = scalar_lea.hbm %s1450_s6, %s945_s24  ;;  %s1462_s30 = sand.u32 1, %s1163_s22  }
 0x6cb   : > { %s1392_s11 = scalar_lea.sflag [#allocation5], %s1462_s30  ;;  %s1093_s12 = scalar_lea.vmem %s1388_s29, 512 }
 0x6cc   : > { %p1094_p2 = scmp.ne.s32.totalorder %s1388_s29, %s1093_s12  ;;  %s1192_s25 = smov [#allocation4]  }
 0x6cd   : > { %s1097_s26 = sshll.u32 %s1192_s25, 4  ;;  %s1098_s26 = int_to_ptr.vmem [resolvable:$false] %s1097_s26 }
 0x6ce   : > { %p1095_p4 = pnand %p1094_p2, %p1279_p3  ;;  %s1099_s27 = scalar_lea.vmem %s1098_s26, 1024 }
 0x6cf   : > { %p1100_p6 = scmp.lt.s32.totalorder %s1388_s29, %s1098_s26  ;;  %p1101_p7 = scmp.lt.s32.totalorder %s1099_s27, %s1093_s12 }
 0x6d0   : > { %p1096_p5 = pneg %p1095_p4 }
 0x6d1   : > { %p1102_p8 = por %p1101_p7, %p1100_p6 }
 0x6d3   : > { %p1103_p10 = pnand %p1102_p8, %p1096_p5 }
 0x6d5   : > { %1106 = shalt.err (!%p1103_p10)
}
 0x6d6   : > { %s1107_s14 = scalar_lea.hbm %s1385_s20, 512  ;;  %s1111_s16 = scalar_lea.hbm %s1450_s6, 1024 }
 0x6d7   : > { %p1108_p11 = scmp.ne.s32.totalorder %s1385_s20, %s1107_s14  ;;  %p1112_p0 = scmp.lt.u32.totalorder %s1385_s20, %s1450_s6 }
 0x6d8   : > { %p1113_p1 = scmp.lt.u32.totalorder %s1111_s16, %s1107_s14  ;;  %p1115_p4 = scmp.lt.u32.totalorder %s1107_s14, %s1385_s20 }
 0x6d9   : > { %p1109_p12 = pnand %p1108_p11, %p1279_p3 }
 0x6da   : > { %p1114_p2 = por %p1113_p1, %p1112_p0 }
 0x6db   : > { %p1110_p13 = pneg %p1109_p12 }
 0x6dc   : > { %p1116_p5 = por %p1115_p4, %p1114_p2 }
 0x6de   : > { %p1117_p6 = pnand %p1116_p5, %p1110_p13 }
 0x6e0   : > { %1120 = shalt.err (!%p1117_p6)
}
 0x6e1   : > { %s1193_s17 = smov 128   ;;  %s1194_s24 = smov 8  }
 0x6e2   : > { %994 = dma.vmem_to_hbm [thread:$0]  (%p1279_p3), %s1388_s29, 512, %s1385_s20, %s1392_s11, %s1193_s17, %s1193_s17, %s1194_s24  }
 0x6e3 PF: > { %p1000_p7 = scmp.ge.s32.totalorder %s1187_s28, 2  ;;  %s830_s18 = sand.u32 1, %s1159_s21  }
 0x6e4   : > { %s831_s19 = scalar_lea.sflag [#allocation5], %s830_s18 }
 0x6e5   : > { %p997_p8 = pnand %p1000_p7, %p1289_p9 }
 0x6e7   : > { %1154 = dma.done.wait (!%p997_p8), %s831_s19, 512  }
 0x6e8   : > { %1156 = vsyncadd (!%p997_p8), %s831_s19, 4294966784  ;;  %s19_s28 = sadd.s32 1, %s1187_s28   ;;  %s1463_s30 = sld [smem:[#allocation11_spill]] }
 0x6e9   : > { %p16_p10 = scmp.ge.s32.totalorder %s19_s28, 10   ;;  %s1464_s24 = sld [smem:[#allocation7_spill]] }
 0x6ea   : > { %s1465_s25 = sld [smem:[#allocation8_spill]]  ;;  %s1466_s26 = sld [smem:[#allocation9_spill]] }
 0x6eb   : > { %s1467_s27 = sld [smem:[#allocation10_spill]]  ;;  %s1468_s21 = smov %s1163_s22 }
 0x6ec   : > { %s1469_s22 = smov %s1167_s23  ;;  %18 = sbr.rel (!%p16_p10) target bundleno = 5 (0x5), region = 93 }
 0x6ee   : > { %s1470_s23 = smov %s1463_s30 }
 0x6f3   :  { %836 = vsyncpa [#allocation5], 1 }
 0x6f4   :  { %838 = vsyncpa [#allocation5 + $0x1], 1 }

</bundles_post_ra>
